<compile_context>
chip_gen: v7x
topology: tpu7x:2x2x1
jax: 0.10.0
libtpu: 0.0.40
codegen_flags: <defaults>
</compile_context>

<pallas_src>
from functools import partial

import jax
import jax.numpy as jnp
from jax.experimental import pallas as pl
from jax.experimental.pallas import tpu as pltpu


def _round_up(x, m):
    return ((x + m - 1) // m) * m


def _choose_batch_tile(B):
    """Batch tile size.

    * B < 128: one grid step; round to the 16-row bf16 sublane-pack granule.
    * otherwise: biggest of (512, 256, 128) that still yields >= 2 grid steps
      (so v7x's two TensorCores both get work); 512 fills the 256-row MXU on
      v6e/v7x and keeps per-step overhead / DMA-block size favorable.
    """
    if B < 128:
        return _round_up(B, 16)
    for tb in (512, 256, 128):
        if pl.cdiv(B, tb) >= 2:
            return tb
    return 128


def mlp_kernel(x_ref, w1_ref, b1_ref, w2_ref, b2_ref, w3_ref, b3_ref, o_ref):
    # Activations arrive in f32 and are cast to bf16 here (cheap VPU work hidden
    # under the MXU) -> no separate wrapper cast pass. Weights are pre-cast bf16.
    # MXU accumulates in f32; bias add + ReLU stay in f32 on the VPU; cast back
    # to bf16 only as the input of the next dot.
    x = x_ref[...].astype(jnp.bfloat16)
    h1 = jnp.dot(x, w1_ref[...], preferred_element_type=jnp.float32) + b1_ref[...]
    h1 = jnp.maximum(h1, 0.0).astype(jnp.bfloat16)
    h2 = jnp.dot(h1, w2_ref[...], preferred_element_type=jnp.float32) + b2_ref[...]
    h2 = jnp.maximum(h2, 0.0).astype(jnp.bfloat16)
    logits = jnp.dot(h2, w3_ref[...], preferred_element_type=jnp.float32) + b3_ref[...]
    o_ref[...] = logits.astype(o_ref.dtype)


def prepare_params(params):
    """One-time (init-time) conversion of the f32 Linear params for the kernel:
    bf16 weights, last layer padded to a lane-dense 128-wide output."""
    w1, b1, w2, b2, w3, b3 = params
    output_dim = w3.shape[1]
    n_out = _round_up(output_dim, 128)
    w1_b = w1.astype(jnp.bfloat16)
    w2_b = w2.astype(jnp.bfloat16)
    w3_p = jnp.zeros((w3.shape[0], n_out), jnp.bfloat16).at[:, :output_dim].set(
        w3.astype(jnp.bfloat16))
    b3_p = jnp.zeros((1, n_out), jnp.float32).at[:, :output_dim].set(b3)
    return (w1_b, b1, w2_b, b2, w3_p, b3_p)


@partial(jax.jit, static_argnames=("output_dim",))
def neural_network_forward(x_nchw, prepared, output_dim):
    """Forward pass of NeuralNetwork. x_nchw: (B, C, H, W) float32."""
    w1_b, b1, w2_b, b2, w3_p, b3_p = prepared
    B = x_nchw.shape[0]

    # nn.Flatten(): row-major flatten of all non-batch dims (plain JAX glue).
    x = x_nchw.reshape(B, -1)
    input_dim = x.shape[1]
    assert input_dim == w1_b.shape[0]
    n_out = w3_p.shape[1]

    TB = _choose_batch_tile(B)
    B_pad = _round_up(B, TB)
    if B_pad != B:
        # Padded rows are zeros; they are computed but sliced off below.
        x = jnp.pad(x, ((0, B_pad - B), (0, 0)))

    grid = (B_pad // TB,)
    batch_spec = lambda shape: pl.BlockSpec(shape, lambda i: (i, 0))
    const_spec = lambda shape: pl.BlockSpec(shape, lambda i: (0, 0))  # resident weights

    out = pl.pallas_call(
        mlp_kernel,
        out_shape=jax.ShapeDtypeStruct((B_pad, n_out), jnp.float32),
        grid=grid,
        in_specs=[
            batch_spec((TB, input_dim)),
            const_spec(w1_b.shape), const_spec(b1.shape),
            const_spec(w2_b.shape), const_spec(b2.shape),
            const_spec(w3_p.shape), const_spec(b3_p.shape),
        ],
        out_specs=batch_spec((TB, n_out)),
        compiler_params=pltpu.CompilerParams(
            dimension_semantics=("parallel",),  # v7x megacore shards the batch axis
        ),
    )(x, w1_b, b1, w2_b, b2, w3_p, b3_p)

    return out[:B, :output_dim]


def init_params(key, input_dim, hidden, output_dim):
    ks = jax.random.split(key, 6)

    def lin(kw, kb, fan_in, fan_out):
        bound = 1.0 / jnp.sqrt(fan_in)
        w = jax.random.uniform(kw, (fan_in, fan_out), jnp.float32, -bound, bound)
        b = jax.random.uniform(kb, (1, fan_out), jnp.float32, -bound, bound)
        return w, b

    w1, b1 = lin(ks[0], ks[1], input_dim, hidden)
    w2, b2 = lin(ks[2], ks[3], hidden, hidden)
    w3, b3 = lin(ks[4], ks[5], hidden, output_dim)
    return (w1, b1, w2, b2, w3, b3)


def _ref_forward_bf16(x_nchw, params):
    # Pure-JAX reference with the same bf16-operand / f32-accumulate recipe.
    w1, b1, w2, b2, w3, b3 = params
    xf = x_nchw.reshape(x_nchw.shape[0], -1).astype(jnp.bfloat16)
    h1 = jnp.dot(xf, w1.astype(jnp.bfloat16), preferred_element_type=jnp.float32) + b1
    h1 = jnp.maximum(h1, 0.0).astype(jnp.bfloat16)
    h2 = jnp.dot(h1, w2.astype(jnp.bfloat16), preferred_element_type=jnp.float32) + b2
    h2 = jnp.maximum(h2, 0.0).astype(jnp.bfloat16)
    return jnp.dot(h2, w3.astype(jnp.bfloat16), preferred_element_type=jnp.float32) + b3


if __name__ == "__main__":
    key = jax.random.PRNGKey(0)
    kx, kp = jax.random.split(key)

    # Small shapes consistent with the module: B=2, C=4, H=W=8 -> input_dim=256.
    B, C, H, W = 2, 4, 8, 8
    input_dim = C * H * W
    hidden = 512
    output_dim = 10

    x = jax.random.normal(kx, (B, C, H, W), jnp.float32)
    params = init_params(kp, input_dim, hidden, output_dim)
    prepared = prepare_params(params)   # one-time bf16 cast + lane-pad (hoisted)

    out = neural_network_forward(x, prepared, output_dim)
    out = jax.block_until_ready(out)

    ref = _ref_forward_bf16(x, params)
    assert out.shape == (B, output_dim)
    assert jnp.allclose(out, ref, atol=2e-2, rtol=2e-2)

    print("KERNEL_OK")
</pallas_src>

<mosaic_0001>
module attributes {stable_mosaic.version = 11 : i64} {
  func.func @mlp_kernel(%arg0: i32, %arg1: memref<16x256xf32, #tpu.memory_space<vmem>>, %arg2: memref<256x512xbf16, #tpu.memory_space<vmem>>, %arg3: memref<1x512xf32, #tpu.memory_space<vmem>>, %arg4: memref<512x512xbf16, #tpu.memory_space<vmem>>, %arg5: memref<1x512xf32, #tpu.memory_space<vmem>>, %arg6: memref<512x128xbf16, #tpu.memory_space<vmem>>, %arg7: memref<1x128xf32, #tpu.memory_space<vmem>>, %arg8: memref<16x128xf32, #tpu.memory_space<vmem>>) attributes {dimension_semantics = [#tpu.dimension_semantics<parallel>], iteration_bounds = array<i64: 1>, scalar_prefetch = 0 : i64, scratch_operands = 0 : i64, tpu.core_type = #tpu.core_type<tc>, window_params = [{transform_indices = @transform_0, window_bounds = array<i64: 16, 256>}, {pipeline_mode = #tpu.pipeline_mode<synchronous>, transform_indices = @transform_1, window_bounds = array<i64: 256, 512>}, {pipeline_mode = #tpu.pipeline_mode<synchronous>, transform_indices = @transform_2, window_bounds = array<i64: 1, 512>}, {pipeline_mode = #tpu.pipeline_mode<synchronous>, transform_indices = @transform_3, window_bounds = array<i64: 512, 512>}, {pipeline_mode = #tpu.pipeline_mode<synchronous>, transform_indices = @transform_4, window_bounds = array<i64: 1, 512>}, {pipeline_mode = #tpu.pipeline_mode<synchronous>, transform_indices = @transform_5, window_bounds = array<i64: 512, 128>}, {pipeline_mode = #tpu.pipeline_mode<synchronous>, transform_indices = @transform_6, window_bounds = array<i64: 1, 128>}, {transform_indices = @transform_7, window_bounds = array<i64: 16, 128>}]} {
    %c0 = arith.constant 0 : index
    %c0_0 = arith.constant 0 : index
    %0 = vector.load %arg1[%c0, %c0_0] : memref<16x256xf32, #tpu.memory_space<vmem>>, vector<16x256xf32>
    %1 = arith.truncf %0 : vector<16x256xf32> to vector<16x256xbf16>
    %c0_1 = arith.constant 0 : index
    %c0_2 = arith.constant 0 : index
    %2 = vector.load %arg2[%c0_1, %c0_2] : memref<256x512xbf16, #tpu.memory_space<vmem>>, vector<256x512xbf16>
    %cst = arith.constant dense<0.000000e+00> : vector<16x512xf32>
    %3 = tpu.matmul %1, %2, %cst {dimension_numbers = #tpu.dot_dimension_numbers<[1], [0], [0], [1], [0, 0, 1, 1], [], []>} : vector<16x256xbf16>, vector<256x512xbf16>, vector<16x512xf32> -> vector<16x512xf32>
    %c0_3 = arith.constant 0 : index
    %c0_4 = arith.constant 0 : index
    %4 = vector.load %arg3[%c0_3, %c0_4] : memref<1x512xf32, #tpu.memory_space<vmem>>, vector<1x512xf32>
    %5 = vector.broadcast %4 : vector<1x512xf32> to vector<16x512xf32>
    %6 = arith.addf %3, %5 : vector<16x512xf32>
    %cst_5 = arith.constant 0.000000e+00 : f32
    %7 = vector.broadcast %cst_5 : f32 to vector<16x512xf32>
    %8 = arith.maximumf %6, %7 : vector<16x512xf32>
    %9 = arith.truncf %8 : vector<16x512xf32> to vector<16x512xbf16>
    %c0_6 = arith.constant 0 : index
    %c0_7 = arith.constant 0 : index
    %10 = vector.load %arg4[%c0_6, %c0_7] : memref<512x512xbf16, #tpu.memory_space<vmem>>, vector<512x512xbf16>
    %cst_8 = arith.constant dense<0.000000e+00> : vector<16x512xf32>
    %11 = tpu.matmul %9, %10, %cst_8 {dimension_numbers = #tpu.dot_dimension_numbers<[1], [0], [0], [1], [0, 0, 1, 1], [], []>} : vector<16x512xbf16>, vector<512x512xbf16>, vector<16x512xf32> -> vector<16x512xf32>
    %c0_9 = arith.constant 0 : index
    %c0_10 = arith.constant 0 : index
    %12 = vector.load %arg5[%c0_9, %c0_10] : memref<1x512xf32, #tpu.memory_space<vmem>>, vector<1x512xf32>
    %13 = vector.broadcast %12 : vector<1x512xf32> to vector<16x512xf32>
    %14 = arith.addf %11, %13 : vector<16x512xf32>
    %cst_11 = arith.constant 0.000000e+00 : f32
    %15 = vector.broadcast %cst_11 : f32 to vector<16x512xf32>
    %16 = arith.maximumf %14, %15 : vector<16x512xf32>
    %17 = arith.truncf %16 : vector<16x512xf32> to vector<16x512xbf16>
    %c0_12 = arith.constant 0 : index
    %c0_13 = arith.constant 0 : index
    %18 = vector.load %arg6[%c0_12, %c0_13] : memref<512x128xbf16, #tpu.memory_space<vmem>>, vector<512x128xbf16>
    %cst_14 = arith.constant dense<0.000000e+00> : vector<16x128xf32>
    %19 = tpu.matmul %17, %18, %cst_14 {dimension_numbers = #tpu.dot_dimension_numbers<[1], [0], [0], [1], [0, 0, 1, 1], [], []>} : vector<16x512xbf16>, vector<512x128xbf16>, vector<16x128xf32> -> vector<16x128xf32>
    %c0_15 = arith.constant 0 : index
    %c0_16 = arith.constant 0 : index
    %20 = vector.load %arg7[%c0_15, %c0_16] : memref<1x128xf32, #tpu.memory_space<vmem>>, vector<1x128xf32>
    %21 = vector.broadcast %20 : vector<1x128xf32> to vector<16x128xf32>
    %22 = arith.addf %19, %21 : vector<16x128xf32>
    %c0_17 = arith.constant 0 : index
    %c0_18 = arith.constant 0 : index
    %23 = vector.load %arg8[%c0_17, %c0_18] : memref<16x128xf32, #tpu.memory_space<vmem>>, vector<16x128xf32>
    tpu.vector_store %arg8[%c0_17, %c0_18], %22 {strides = array<i32>} : memref<16x128xf32, #tpu.memory_space<vmem>>, vector<16x128xf32>,
    return
  }
  func.func @transform_0(%arg0: i32) -> (i32, i32) {
    %c0_i32 = arith.constant 0 : i32
    %c0_i32_0 = arith.constant 0 : i32
    return %arg0, %c0_i32 : i32, i32
  }
  func.func @transform_1(%arg0: i32) -> (i32, i32) {
    %c0_i32 = arith.constant 0 : i32
    %c0_i32_0 = arith.constant 0 : i32
    %c0_i32_1 = arith.constant 0 : i32
    return %c0_i32, %c0_i32_0 : i32, i32
  }
  func.func @transform_2(%arg0: i32) -> (i32, i32) {
    %c0_i32 = arith.constant 0 : i32
    %c0_i32_0 = arith.constant 0 : i32
    %c0_i32_1 = arith.constant 0 : i32
    return %c0_i32, %c0_i32_0 : i32, i32
  }
  func.func @transform_3(%arg0: i32) -> (i32, i32) {
    %c0_i32 = arith.constant 0 : i32
    %c0_i32_0 = arith.constant 0 : i32
    %c0_i32_1 = arith.constant 0 : i32
    return %c0_i32, %c0_i32_0 : i32, i32
  }
  func.func @transform_4(%arg0: i32) -> (i32, i32) {
    %c0_i32 = arith.constant 0 : i32
    %c0_i32_0 = arith.constant 0 : i32
    %c0_i32_1 = arith.constant 0 : i32
    return %c0_i32, %c0_i32_0 : i32, i32
  }
  func.func @transform_5(%arg0: i32) -> (i32, i32) {
    %c0_i32 = arith.constant 0 : i32
    %c0_i32_0 = arith.constant 0 : i32
    %c0_i32_1 = arith.constant 0 : i32
    return %c0_i32, %c0_i32_0 : i32, i32
  }
  func.func @transform_6(%arg0: i32) -> (i32, i32) {
    %c0_i32 = arith.constant 0 : i32
    %c0_i32_0 = arith.constant 0 : i32
    %c0_i32_1 = arith.constant 0 : i32
    return %c0_i32, %c0_i32_0 : i32, i32
  }
  func.func @transform_7(%arg0: i32) -> (i32, i32) {
    %c0_i32 = arith.constant 0 : i32
    %c0_i32_0 = arith.constant 0 : i32
    return %arg0, %c0_i32 : i32, i32
  }
}

</mosaic_0001>

<bundles_post_ra>
// kernel: neural_network_forward.1
= control target key start
LH: loop header
LB: loop body
LE: loop exit
PB: predicated region body
PF: predicated region fallthrough
CT: control target
= control target key end

     0   :  { %12 = vsyncpa [#allocation3], 0  ;;  %s2730_s0 = inlined_call_operand.vmem [shape: f32[16,256], index: 0, kind: input, shape index: {}]   ;;  %s2731_s1 = inlined_call_operand.hbm [shape: bf16[256,512], index: 1, kind: input, shape index: {}]   ;;  %s2732_s2 = inlined_call_operand.vmem [shape: f32[1,512], index: 2, kind: input, shape index: {}]   ;;  %s2733_s3 = inlined_call_operand.hbm [shape: bf16[512,512], index: 3, kind: input, shape index: {}]   ;;  %s2734_s4 = inlined_call_operand.vmem [shape: f32[1,512], index: 4, kind: input, shape index: {}]   ;;  %s2735_s5 = inlined_call_operand.hbm [shape: bf16[512,128], index: 5, kind: input, shape index: {}]   ;;  %s2736_s6 = inlined_call_operand.vmem [shape: f32[1,128], index: 6, kind: input, shape index: {}]   ;;  %s2737_s7 = inlined_call_operand.vmem [shape: f32[16,128], index: 7, kind: output, shape index: {}]  }
   0x1   :  { %13 = vsyncpa [#allocation5], 0  ;;  %s2587_s24 = smov [#allocation4]   ;;  %s2588_s26 = smov [#allocation2]  }
   0x2   :  { %s35_s25 = sshll.u32 %s2587_s24, 4  ;;  %s21_s27 = sshll.u32 %s2588_s26, 4  ;;  %s36_s25 = int_to_ptr.vmem [resolvable:$true] %s35_s25  ;;  %s2634_s27 = int_to_ptr.vmem [resolvable:$true] %s21_s27 }
   0x3   :  { %s2517_s30 = scalar_lea.hbm %s2733_s3, 16384 }
   0x4   :  { %p2518_p0 = scmp.ne.s32.totalorder %s2733_s3, %s2517_s30  ;;  %p2521_p1 = scmp.lt.u32.totalorder %s2517_s30, %s2733_s3 }
   0x6   :  { %p2523_p2 = pnand %p2521_p1, %p2518_p0 }
   0x8   :  { %2526 = shalt.err (!%p2523_p2)
}
   0x9   :  { %s2527_s12 = scalar_lea.vmem %s36_s25, 16384  ;;  %p2532_p4 = scmp.lt.s32.totalorder %s36_s25, %s36_s25 }
   0xa   :  { %p2528_p3 = scmp.ne.s32.totalorder %s36_s25, %s2527_s12  ;;  %p2533_p5 = scmp.lt.s32.totalorder %s2527_s12, %s2527_s12 }
   0xc   :  { %p2534_p6 = por %p2533_p5, %p2532_p4 }
   0xe   :  { %p2535_p7 = pnand %p2534_p6, %p2528_p3 }
  0x10   :  { %2538 = shalt.err (!%p2535_p7)
}
  0x11   :  { %s2589_s13 = smov 256   ;;  %s2590_s14 = smov 16  }
  0x12   :  { %41 = dma.hbm_to_vmem [thread:$0]  %s2733_s3, 16384, %s36_s25, [#allocation5], %s2589_s13, %s2589_s13, %s2590_s14  }
  0x13   :  { %s2539_s19 = scalar_lea.hbm %s2731_s1, 8192 }
  0x14   :  { %p2540_p8 = scmp.ne.s32.totalorder %s2731_s1, %s2539_s19  ;;  %p2543_p9 = scmp.lt.u32.totalorder %s2539_s19, %s2731_s1 }
  0x16   :  { %p2545_p10 = pnand %p2543_p9, %p2540_p8 }
  0x18   :  { %2548 = shalt.err (!%p2545_p10)
}
  0x19   :  { %s2549_s24 = scalar_lea.vmem %s2634_s27, 8192  ;;  %p2554_p12 = scmp.lt.s32.totalorder %s2634_s27, %s2634_s27 }
  0x1a   :  { %p2550_p11 = scmp.ne.s32.totalorder %s2634_s27, %s2549_s24  ;;  %p2555_p13 = scmp.lt.s32.totalorder %s2549_s24, %s2549_s24 }
  0x1c   :  { %p2556_p0 = por %p2555_p13, %p2554_p12 }
  0x1e   :  { %p2557_p1 = pnand %p2556_p0, %p2550_p11 }
  0x20   :  { %2560 = shalt.err (!%p2557_p1)
}
  0x21   :  { %27 = dma.hbm_to_vmem [thread:$0]  %s2731_s1, 8192, %s2634_s27, [#allocation3], %s2589_s13, %s2589_s13, %s2590_s14  }
  0x22   :  { %s2591_s26 = smov [#allocation6]   ;;  %s2561_s8 = scalar_lea.hbm %s2735_s5, 4096 }
  0x23   :  { %s49_s28 = sshll.u32 %s2591_s26, 4  ;;  %p2562_p2 = scmp.ne.s32.totalorder %s2735_s5, %s2561_s8  ;;  %s50_s28 = int_to_ptr.vmem [resolvable:$true] %s49_s28 }
  0x24   :  { %p2565_p3 = scmp.lt.u32.totalorder %s2561_s8, %s2735_s5 }
  0x26   :  { %p2567_p4 = pnand %p2565_p3, %p2562_p2 }
  0x28   :  { %2570 = shalt.err (!%p2567_p4)
}
  0x29   :  { %s2571_s15 = scalar_lea.vmem %s50_s28, 4096  ;;  %p2576_p6 = scmp.lt.s32.totalorder %s50_s28, %s50_s28 }
  0x2a   :  { %p2572_p5 = scmp.ne.s32.totalorder %s50_s28, %s2571_s15  ;;  %p2577_p7 = scmp.lt.s32.totalorder %s2571_s15, %s2571_s15 }
  0x2c   :  { %p2578_p8 = por %p2577_p7, %p2576_p6 }
  0x2e   :  { %p2579_p9 = pnand %p2578_p8, %p2572_p5 }
  0x30   :  { %2582 = shalt.err (!%p2579_p9)
}
  0x31   :  { %s2592_s1 = smov 64   ;;  %s2593_s27 = smov 4  }
  0x32   :  { %55 = dma.hbm_to_vmem [thread:$0]  %s2735_s5, 4096, %s50_s28, [#allocation5], %s2592_s1, %s2592_s1, %s2593_s27  }
  0x33   :  { %2583 = dma.done.wait [#allocation3], 8192  }
  0x34   :  { %2584 = vsyncadd [#allocation3], 4294959104 }
  0x35   :  { %2585 = dma.done.wait [#allocation5], 20480  }
  0x36   :  { %2586 = vsyncadd [#allocation5], 4294946816  ;;  %v2197_v0 = vld [vmem:[#allocation2 + $0x4] ss:$16 sps:$4 sm:$0xff]   ;;  %v2199_v1 = vld [vmem:[#allocation2] ss:$16 sps:$4 sm:$0xff]  }
  0x37   :  { %480 = vmatprep.subr.bf16.mxu0 %v2197_v0  ;;  %v2200_v2 = vld [vmem:[#allocation2 + $0x24] ss:$16 sps:$4 sm:$0xff]   ;;  %v2202_v3 = vld [vmem:[#allocation2 + $0x20] ss:$16 sps:$4 sm:$0xff]   ;;  %v2244_v13 = vld [vmem:[#allocation2 + $0xc] ss:$16 sps:$4 sm:$0xff]  }
  0x38   :  { %481 = vmatpush1.bf16.msra.mxu0 %v2199_v1  ;;  %v2203_v4 = vld [vmem:[#allocation2 + $0x44] ss:$16 sps:$4 sm:$0xff]   ;;  %v2205_v5 = vld [vmem:[#allocation2 + $0x40] ss:$16 sps:$4 sm:$0xff]   ;;  %v2247_v14 = vld [vmem:[#allocation2 + $0x8] ss:$16 sps:$4 sm:$0xff]   ;;  %523 = vmatprep.subr.bf16.mxu1 %v2244_v13 }
  0x39   :  { %482 = vmatprep.subr.bf16.mxu0 %v2200_v2  ;;  %v2206_v6 = vld [vmem:[#allocation2 + $0x64] ss:$16 sps:$4 sm:$0xff]   ;;  %v2208_v7 = vld [vmem:[#allocation2 + $0x60] ss:$16 sps:$4 sm:$0xff]   ;;  %v69_v15 = vld [vmem:[%s2730_s0 + $0x8] sm:$0xff]  ;;  %524 = vmatpush1.bf16.msra.mxu1 %v2247_v14 }
  0x3a   :  { %v2209_v8 = vld [vmem:[#allocation2 + $0x84] ss:$16 sps:$4 sm:$0xff]   ;;  %v2211_v9 = vld [vmem:[#allocation2 + $0x80] ss:$16 sps:$4 sm:$0xff]   ;;  %v71_v18 = vld [vmem:[%s2730_s0 + $0x18] sm:$0xff] }
  0x3b   :  { %v2212_v10 = vld [vmem:[#allocation2 + $0xa4] ss:$16 sps:$4 sm:$0xff]   ;;  %v2214_v11 = vld [vmem:[#allocation2 + $0xa0] ss:$16 sps:$4 sm:$0xff]   ;;  %v73_v19 = vpack.c.bf16 %v71_v18, %v69_v15  ;;  %v2248_v20 = vld [vmem:[#allocation2 + $0x2c] ss:$16 sps:$4 sm:$0xff]  }
  0x3c   :  { %483 = vmatpush1.bf16.msra.mxu0 %v2202_v3  ;;  %v2215_v12 = vld [vmem:[#allocation2 + $0xc4] ss:$16 sps:$4 sm:$0xff]   ;;  %v2217_v16 = vld [vmem:[#allocation2 + $0xc0] ss:$16 sps:$4 sm:$0xff]   ;;  %v2250_v21 = vld [vmem:[#allocation2 + $0x28] ss:$16 sps:$4 sm:$0xff]   ;;  %525 = vmatprep.subr.bf16.mxu1 %v2248_v20 }
  0x3d   :  { %484 = vmatprep.subr.bf16.mxu0 %v2203_v4  ;;  %v2218_v17 = vld [vmem:[#allocation2 + $0xe4] ss:$16 sps:$4 sm:$0xff]   ;;  %512 = vmatprep.mubr.bf16.mxu0 %v73_v19  ;;  %v2251_v22 = vld [vmem:[#allocation2 + $0x4c] ss:$16 sps:$4 sm:$0xff]   ;;  %v2220_v23 = vld [vmem:[#allocation2 + $0xe0] ss:$16 sps:$4 sm:$0xff]  }
  0x3e   :  { %v2221_v24 = vld [vmem:[#allocation2 + $0x104] ss:$16 sps:$4 sm:$0xff]   ;;  %555 = vmatprep.mubr.bf16.mxu1 %v73_v19  ;;  %526 = vmatpush1.bf16.msra.mxu1 %v2250_v21  ;;  %v2253_v25 = vld [vmem:[#allocation2 + $0x48] ss:$16 sps:$4 sm:$0xff]   ;;  %v2254_v26 = vld [vmem:[#allocation2 + $0x6c] ss:$16 sps:$4 sm:$0xff]  }
  0x3f   :  { %527 = vmatprep.subr.bf16.mxu1 %v2251_v22  ;;  %v2223_v27 = vld [vmem:[#allocation2 + $0x100] ss:$16 sps:$4 sm:$0xff]   ;;  %v2224_v28 = vld [vmem:[#allocation2 + $0x124] ss:$16 sps:$4 sm:$0xff]   ;;  %v2256_v29 = vld [vmem:[#allocation2 + $0x68] ss:$16 sps:$4 sm:$0xff]  }
  0x40   :  { %485 = vmatpush1.bf16.msra.mxu0 %v2205_v5  ;;  %v2257_v30 = vld [vmem:[#allocation2 + $0x8c] ss:$16 sps:$4 sm:$0xff]   ;;  %v2226_v31 = vld [vmem:[#allocation2 + $0x120] ss:$16 sps:$4 sm:$0xff]   ;;  %v2227_v32 = vld [vmem:[#allocation2 + $0x144] ss:$16 sps:$4 sm:$0xff]  }
  0x41   :  { %486 = vmatprep.subr.bf16.mxu0 %v2206_v6  ;;  %v2259_v33 = vld [vmem:[#allocation2 + $0x88] ss:$16 sps:$4 sm:$0xff]   ;;  %v2260_v34 = vld [vmem:[#allocation2 + $0xac] ss:$16 sps:$4 sm:$0xff]   ;;  %v2229_v35 = vld [vmem:[#allocation2 + $0x140] ss:$16 sps:$4 sm:$0xff]  }
  0x42   :  { %528 = vmatpush1.bf16.msra.mxu1 %v2253_v25  ;;  %v2230_v36 = vld [vmem:[#allocation2 + $0x164] ss:$16 sps:$4 sm:$0xff]   ;;  %v2262_v37 = vld [vmem:[#allocation2 + $0xa8] ss:$16 sps:$4 sm:$0xff]   ;;  %v2263_v38 = vld [vmem:[#allocation2 + $0xcc] ss:$16 sps:$4 sm:$0xff]  }
  0x43   :  { %529 = vmatprep.subr.bf16.mxu1 %v2254_v26  ;;  %v2232_v39 = vld [vmem:[#allocation2 + $0x160] ss:$16 sps:$4 sm:$0xff]   ;;  %v2233_v40 = vld [vmem:[#allocation2 + $0x184] ss:$16 sps:$4 sm:$0xff]   ;;  %v2265_v41 = vld [vmem:[#allocation2 + $0xc8] ss:$16 sps:$4 sm:$0xff]  }
  0x44   :  { %487 = vmatpush1.bf16.msra.mxu0 %v2208_v7  ;;  %v2266_v42 = vld [vmem:[#allocation2 + $0xec] ss:$16 sps:$4 sm:$0xff]   ;;  %v2235_v43 = vld [vmem:[#allocation2 + $0x180] ss:$16 sps:$4 sm:$0xff]   ;;  %v2236_v44 = vld [vmem:[#allocation2 + $0x1a4] ss:$16 sps:$4 sm:$0xff]  }
  0x45   :  { %488 = vmatprep.subr.bf16.mxu0 %v2209_v8  ;;  %v2268_v45 = vld [vmem:[#allocation2 + $0xe8] ss:$16 sps:$4 sm:$0xff]   ;;  %v2269_v46 = vld [vmem:[#allocation2 + $0x10c] ss:$16 sps:$4 sm:$0xff]   ;;  %v2238_v47 = vld [vmem:[#allocation2 + $0x1a0] ss:$16 sps:$4 sm:$0xff]  }
  0x46   :  { %530 = vmatpush1.bf16.msra.mxu1 %v2256_v29  ;;  %v2239_v48 = vld [vmem:[#allocation2 + $0x1c4] ss:$16 sps:$4 sm:$0xff]   ;;  %v2271_v49 = vld [vmem:[#allocation2 + $0x108] ss:$16 sps:$4 sm:$0xff]   ;;  %v2272_v50 = vld [vmem:[#allocation2 + $0x12c] ss:$16 sps:$4 sm:$0xff]  }
  0x47   :  { %531 = vmatprep.subr.bf16.mxu1 %v2257_v30  ;;  %v2241_v51 = vld [vmem:[#allocation2 + $0x1c0] ss:$16 sps:$4 sm:$0xff]   ;;  %v2242_v52 = vld [vmem:[#allocation2 + $0x1e4] ss:$16 sps:$4 sm:$0xff]   ;;  %v2274_v53 = vld [vmem:[#allocation2 + $0x128] ss:$16 sps:$4 sm:$0xff]  }
  0x48   :  { %489 = vmatpush1.bf16.msra.mxu0 %v2211_v9  ;;  %v2275_v54 = vld [vmem:[#allocation2 + $0x14c] ss:$16 sps:$4 sm:$0xff]   ;;  %v2246_v55 = vld [vmem:[#allocation2 + $0x1e0] ss:$16 sps:$4 sm:$0xff]   ;;  %v2277_v58 = vld [vmem:[#allocation2 + $0x148] ss:$16 sps:$4 sm:$0xff]  }
  0x49   :  { %490 = vmatprep.subr.bf16.mxu0 %v2212_v10  ;;  %v68_v56 = vld [vmem:[%s2730_s0] sm:$0xff]  ;;  %v70_v57 = vld [vmem:[%s2730_s0 + $0x10] sm:$0xff]  ;;  %v2278_v60 = vld [vmem:[#allocation2 + $0x16c] ss:$16 sps:$4 sm:$0xff]  }
  0x4a   :  { %532 = vmatpush1.bf16.msra.mxu1 %v2259_v33  ;;  %v2295_v59 = vld [vmem:[#allocation4 + $0x4] ss:$16 sps:$4 sm:$0xff]   ;;  %v72_v61 = vpack.c.bf16 %v70_v57, %v68_v56  ;;  %v2280_v62 = vld [vmem:[#allocation2 + $0x168] ss:$16 sps:$4 sm:$0xff]   ;;  %v2293_v63 = vld [vmem:[#allocation4] ss:$16 sps:$4 sm:$0xff]  }
  0x4b   :  { %533 = vmatprep.subr.bf16.mxu1 %v2260_v34  ;;  %v2301_v0 = vld [vmem:[#allocation4 + $0x24] ss:$16 sps:$4 sm:$0xff]   ;;  %v2281_v1 = vld [vmem:[#allocation2 + $0x18c] ss:$16 sps:$4 sm:$0xff]   ;;  %v2283_v2 = vld [vmem:[#allocation2 + $0x188] ss:$16 sps:$4 sm:$0xff]  }
  0x4c   :  { %491 = vmatpush1.bf16.msra.mxu0 %v2214_v11  ;;  %v2299_v3 = vld [vmem:[#allocation4 + $0x20] ss:$16 sps:$4 sm:$0xff]   ;;  %v2307_v4 = vld [vmem:[#allocation4 + $0x44] ss:$16 sps:$4 sm:$0xff]   ;;  %v2284_v5 = vld [vmem:[#allocation2 + $0x1ac] ss:$16 sps:$4 sm:$0xff]  }
  0x4d   :  { %492 = vmatprep.subr.bf16.mxu0 %v2215_v12  ;;  %v2286_v6 = vld [vmem:[#allocation2 + $0x1a8] ss:$16 sps:$4 sm:$0xff]   ;;  %v2305_v7 = vld [vmem:[#allocation4 + $0x40] ss:$16 sps:$4 sm:$0xff]   ;;  %v2313_v8 = vld [vmem:[#allocation4 + $0x64] ss:$16 sps:$4 sm:$0xff]  }
  0x4e   :  { %534 = vmatpush1.bf16.msra.mxu1 %v2262_v37  ;;  %v2287_v9 = vld [vmem:[#allocation2 + $0x1cc] ss:$16 sps:$4 sm:$0xff]   ;;  %v2289_v10 = vld [vmem:[#allocation2 + $0x1c8] ss:$16 sps:$4 sm:$0xff]   ;;  %v2311_v11 = vld [vmem:[#allocation4 + $0x60] ss:$16 sps:$4 sm:$0xff]  }
  0x4f   :  { %535 = vmatprep.subr.bf16.mxu1 %v2263_v38  ;;  %v2319_v12 = vld [vmem:[#allocation4 + $0x84] ss:$16 sps:$4 sm:$0xff]   ;;  %v2290_v13 = vld [vmem:[#allocation2 + $0x1ec] ss:$16 sps:$4 sm:$0xff]   ;;  %v2292_v14 = vld [vmem:[#allocation2 + $0x1e8] ss:$16 sps:$4 sm:$0xff]  }
  0x50   :  { %493 = vmatpush1.bf16.msra.mxu0 %v2217_v16  ;;  %v2317_v15 = vld [vmem:[#allocation4 + $0x80] ss:$16 sps:$4 sm:$0xff]   ;;  %v2325_v16 = vld [vmem:[#allocation4 + $0xa4] ss:$16 sps:$4 sm:$0xff]   ;;  %v2296_v19 = vld [vmem:[#allocation4 + $0x8] ss:$16 sps:$4 sm:$0xff]  }
  0x51   :  { %494 = vmatprep.subr.bf16.mxu0 %v2218_v17  ;;  %v2298_v17 = vld [vmem:[#allocation4 + $0xc] ss:$16 sps:$4 sm:$0xff]   ;;  %v2323_v18 = vld [vmem:[#allocation4 + $0xa0] ss:$16 sps:$4 sm:$0xff]   ;;  %v2331_v20 = vld [vmem:[#allocation4 + $0xc4] ss:$16 sps:$4 sm:$0xff]  }
  0x52   :  { %536 = vmatpush1.bf16.msra.mxu1 %v2265_v41  ;;  %v2304_v21 = vld [vmem:[#allocation4 + $0x2c] ss:$16 sps:$4 sm:$0xff]   ;;  %v2329_v22 = vld [vmem:[#allocation4 + $0xc0] ss:$16 sps:$4 sm:$0xff]   ;;  %v2362_v57 = vld [vmem:[#allocation4 + $0x168] ss:$16 sps:$4 sm:$0xff]  }
  0x53   :  { %537 = vmatprep.subr.bf16.mxu1 %v2266_v42  ;;  %v2310_v25 = vld [vmem:[#allocation4 + $0x4c] ss:$16 sps:$4 sm:$0xff]   ;;  %v2335_v26 = vld [vmem:[#allocation4 + $0xe0] ss:$16 sps:$4 sm:$0xff]  }
  0x54   :  { %495 = vmatpush1.bf16.msra.mxu0 %v2220_v23  ;;  %v2302_v23 = vld [vmem:[#allocation4 + $0x28] ss:$16 sps:$4 sm:$0xff]   ;;  %v2316_v29 = vld [vmem:[#allocation4 + $0x6c] ss:$16 sps:$4 sm:$0xff]   ;;  %v2341_v30 = vld [vmem:[#allocation4 + $0x100] ss:$16 sps:$4 sm:$0xff]  }
  0x55   :  { %496 = vmatprep.subr.bf16.mxu0 %v2221_v24  ;;  %v2337_v24 = vld [vmem:[#allocation4 + $0xe4] ss:$16 sps:$4 sm:$0xff]   ;;  %v2322_v33 = vld [vmem:[#allocation4 + $0x8c] ss:$16 sps:$4 sm:$0xff]   ;;  %v2347_v34 = vld [vmem:[#allocation4 + $0x120] ss:$16 sps:$4 sm:$0xff]  }
  0x56   :  { %538 = vmatpush1.bf16.msra.mxu1 %v2268_v45  ;;  %v2328_v37 = vld [vmem:[#allocation4 + $0xac] ss:$16 sps:$4 sm:$0xff]   ;;  %v2353_v38 = vld [vmem:[#allocation4 + $0x140] ss:$16 sps:$4 sm:$0xff]  }
  0x57   :  { %539 = vmatprep.subr.bf16.mxu1 %v2269_v46  ;;  %v2334_v41 = vld [vmem:[#allocation4 + $0xcc] ss:$16 sps:$4 sm:$0xff]   ;;  %v2359_v42 = vld [vmem:[#allocation4 + $0x160] ss:$16 sps:$4 sm:$0xff]  }
  0x58   :  { %497 = vmatpush1.bf16.msra.mxu0 %v2223_v27  ;;  %v2308_v27 = vld [vmem:[#allocation4 + $0x48] ss:$16 sps:$4 sm:$0xff]   ;;  %v2340_v45 = vld [vmem:[#allocation4 + $0xec] ss:$16 sps:$4 sm:$0xff]   ;;  %v2365_v46 = vld [vmem:[#allocation4 + $0x180] ss:$16 sps:$4 sm:$0xff]  }
  0x59   :  { %498 = vmatprep.subr.bf16.mxu0 %v2224_v28  ;;  %v2343_v28 = vld [vmem:[#allocation4 + $0x104] ss:$16 sps:$4 sm:$0xff]   ;;  %v2364_v56 = vld [vmem:[#allocation4 + $0x16c] ss:$16 sps:$4 sm:$0xff]  }
  0x5a   :  { %540 = vmatpush1.bf16.msra.mxu1 %v2271_v49  ;;  %v2346_v49 = vld [vmem:[#allocation4 + $0x10c] ss:$16 sps:$4 sm:$0xff]  }
  0x5b   :  { %541 = vmatprep.subr.bf16.mxu1 %v2272_v50  ;;  %v2371_v50 = vld [vmem:[#allocation4 + $0x1a0] ss:$16 sps:$4 sm:$0xff]  }
  0x5c   :  { %499 = vmatpush1.bf16.msra.mxu0 %v2226_v31  ;;  %v2314_v31 = vld [vmem:[#allocation4 + $0x68] ss:$16 sps:$4 sm:$0xff]  }
  0x5d   :  { %500 = vmatprep.subr.bf16.mxu0 %v2227_v32  ;;  %v2349_v32 = vld [vmem:[#allocation4 + $0x124] ss:$16 sps:$4 sm:$0xff]  }
  0x5e   :  { %542 = vmatpush1.bf16.msra.mxu1 %v2274_v53  ;;  %v2350_v53 = vld [vmem:[#allocation4 + $0x128] ss:$16 sps:$4 sm:$0xff]  }
  0x5f   :  { %543 = vmatprep.subr.bf16.mxu1 %v2275_v54  ;;  %v2358_v54 = vld [vmem:[#allocation4 + $0x14c] ss:$16 sps:$4 sm:$0xff]  }
  0x60   :  { %501 = vmatpush1.bf16.msra.mxu0 %v2229_v35  ;;  %v2320_v35 = vld [vmem:[#allocation4 + $0x88] ss:$16 sps:$4 sm:$0xff]  }
  0x61   :  { %502 = vmatprep.subr.bf16.mxu0 %v2230_v36  ;;  %v2355_v36 = vld [vmem:[#allocation4 + $0x144] ss:$16 sps:$4 sm:$0xff]  }
  0x62   :  { %544 = vmatpush1.bf16.msra.mxu1 %v2277_v58  ;;  %v2370_v58 = vld [vmem:[#allocation4 + $0x18c] ss:$16 sps:$4 sm:$0xff]  }
  0x63   :  { %545 = vmatprep.subr.bf16.mxu1 %v2278_v60  ;;  %v2376_v60 = vld [vmem:[#allocation4 + $0x1ac] ss:$16 sps:$4 sm:$0xff]  }
  0x64   :  { %503 = vmatpush1.bf16.msra.mxu0 %v2232_v39  ;;  %v2326_v39 = vld [vmem:[#allocation4 + $0xa8] ss:$16 sps:$4 sm:$0xff]  }
  0x65   :  { %504 = vmatprep.subr.bf16.mxu0 %v2233_v40  ;;  %v2361_v40 = vld [vmem:[#allocation4 + $0x164] ss:$16 sps:$4 sm:$0xff]  }
  0x66   :  { %546 = vmatpush1.bf16.msra.mxu1 %v2280_v62  ;;  %v2379_v62 = vld [vmem:[#allocation4 + $0x1c4] ss:$16 sps:$4 sm:$0xff]  }
  0x67   :  { %547 = vmatprep.subr.bf16.mxu1 %v2281_v1  ;;  %v2380_v1 = vld [vmem:[#allocation4 + $0x1c8] ss:$16 sps:$4 sm:$0xff]  }
  0x68   :  { %505 = vmatpush1.bf16.msra.mxu0 %v2235_v43  ;;  %v2332_v43 = vld [vmem:[#allocation4 + $0xc8] ss:$16 sps:$4 sm:$0xff]  }
  0x69   :  { %506 = vmatprep.subr.bf16.mxu0 %v2236_v44  ;;  %v2367_v44 = vld [vmem:[#allocation4 + $0x184] ss:$16 sps:$4 sm:$0xff]  }
  0x6a   :  { %548 = vmatpush1.bf16.msra.mxu1 %v2283_v2  ;;  %v2385_v2 = vld [vmem:[#allocation4 + $0x1e4] ss:$16 sps:$4 sm:$0xff]  }
  0x6b   :  { %549 = vmatprep.subr.bf16.mxu1 %v2284_v5  ;;  %v2386_v5 = vld [vmem:[#allocation4 + $0x1e8] ss:$16 sps:$4 sm:$0xff]  }
  0x6c   :  { %507 = vmatpush1.bf16.msra.mxu0 %v2238_v47  ;;  %v2338_v47 = vld [vmem:[#allocation4 + $0xe8] ss:$16 sps:$4 sm:$0xff]  }
  0x6d   :  { %508 = vmatprep.subr.bf16.mxu0 %v2239_v48  ;;  %v2373_v48 = vld [vmem:[#allocation4 + $0x1a4] ss:$16 sps:$4 sm:$0xff]  }
  0x6e   :  { %550 = vmatpush1.bf16.msra.mxu1 %v2286_v6  ;;  %v2391_v6 = vld [vmem:[#allocation4 + $0x204] ss:$16 sps:$4 sm:$0xff]  }
  0x6f   :  { %551 = vmatprep.subr.bf16.mxu1 %v2287_v9 }
  0x70   :  { %509 = vmatpush1.bf16.msra.mxu0 %v2241_v51  ;;  %v2344_v51 = vld [vmem:[#allocation4 + $0x108] ss:$16 sps:$4 sm:$0xff]  }
  0x71   :  { %510 = vmatprep.subr.bf16.mxu0 %v2242_v52  ;;  %v2352_v52 = vld [vmem:[#allocation4 + $0x12c] ss:$16 sps:$4 sm:$0xff]  }
  0x72   :  { %552 = vmatpush1.bf16.msra.mxu1 %v2289_v10 }
  0x73   :  { %553 = vmatprep.subr.bf16.mxu1 %v2290_v13 }
  0x74   :  { %511 = vmatpush1.bf16.msra.mxu0 %v2246_v55  ;;  %v2356_v55 = vld [vmem:[#allocation4 + $0x148] ss:$16 sps:$4 sm:$0xff]  }
  0x75   :  { %1368 = vmatprep.subr.bf16.mxu0 %v2295_v59  ;;  %v2368_v59 = vld [vmem:[#allocation4 + $0x188] ss:$16 sps:$4 sm:$0xff]  }
  0x76   :  { %554 = vmatpush1.bf16.msra.mxu1 %v2292_v14 }
  0x77   :  { %513 = vmatmul.mubr.bf16.vlgmr.msra.gmra.mrb[0].mxu0 %v72_v61  ;;  %1454 = vmatprep.subr.bf16.mxu1 %v2298_v17 }
  0x78   :  { %1369 = vmatpush1.bf16.msra.mxu0 %v2293_v63  ;;  %v2382_v63 = vld [vmem:[#allocation4 + $0x1cc] ss:$16 sps:$4 sm:$0xff]  }
  0x79   :  { %1370 = vmatprep.subr.bf16.mxu0 %v2301_v0  ;;  %556 = vmatmul.mubr.bf16.vlgmr.msra.gmra.mrb[0].mxu1 %v72_v61  ;;  %v2374_v61 = vld [vmem:[#allocation4 + $0x1a8] ss:$16 sps:$4 sm:$0xff]   ;;  %v2377_v0 = vld [vmem:[#allocation4 + $0x1c0] ss:$16 sps:$4 sm:$0xff]  }
  0x7a   :  { %1455 = vmatpush1.bf16.msra.mxu1 %v2296_v19 }
  0x7b   :  { %1456 = vmatprep.subr.bf16.mxu1 %v2304_v21 }
  0x7c   :  { %1371 = vmatpush1.bf16.msra.mxu0 %v2299_v3  ;;  %v2388_v3 = vld [vmem:[#allocation4 + $0x1ec] ss:$16 sps:$4 sm:$0xff]  }
  0x7d   :  { %1372 = vmatprep.subr.bf16.mxu0 %v2307_v4  ;;  %v2383_v4 = vld [vmem:[#allocation4 + $0x1e0] ss:$16 sps:$4 sm:$0xff]  }
  0x7e   :  { %1457 = vmatpush1.bf16.msra.mxu1 %v2302_v23 }
  0x7f   :  { %1458 = vmatprep.subr.bf16.mxu1 %v2310_v25 }
  0x80   :  { %1373 = vmatpush1.bf16.msra.mxu0 %v2305_v7  ;;  %v2394_v7 = vld [vmem:[#allocation4 + $0x20c] ss:$16 sps:$4 sm:$0xff]  }
  0x81   :  { %1374 = vmatprep.subr.bf16.mxu0 %v2313_v8  ;;  %v140_v8 = vlaneseq }
  0x82   :  { %1459 = vmatpush1.bf16.msra.mxu1 %v2308_v27 }
  0x83   :  { %1460 = vmatprep.subr.bf16.mxu1 %v2316_v29  ;;  %v2689_v9 = vshrl.u32 %v140_v8, 7  ;;  %v2389_v29 = vld [vmem:[#allocation4 + $0x200] ss:$16 sps:$4 sm:$0xff]   ;;  %v2428_v8 = vld [vmem:[#allocation4 + $0x2c8] ss:$16 sps:$4 sm:$0xff]  }
  0x84   :  { %1375 = vmatpush1.bf16.msra.mxu0 %v2311_v11  ;;  %v138_v11 = vld [vmem:[%s2732_s2] sm:$0xf] }
  0x85   :  { %1376 = vmatprep.subr.bf16.mxu0 %v2319_v12  ;;  %v142_v10 = vsub.s32 0, %v2689_v9  ;;  %v146_v12 = vsub.s32 1, %v2689_v9 }
  0x86   :  { %1461 = vmatpush1.bf16.msra.mxu1 %v2314_v31  ;;  %v2397_v31 = vld [vmem:[#allocation4 + $0x224] ss:$16 sps:$4 sm:$0xff]  }
  0x87   :  { %1462 = vmatprep.subr.bf16.mxu1 %v2322_v33  ;;  %v143_v13 = vrot.slane %v138_v11, %v142_v10  ;;  %v147_v14 = vrot.slane %v138_v11, %v146_v12  ;;  %v2395_v33 = vld [vmem:[#allocation4 + $0x220] ss:$16 sps:$4 sm:$0xff]  }
  0x88   :  { %1377 = vmatpush1.bf16.msra.mxu0 %v2317_v15 }
  0x89   :  { %1378 = vmatprep.subr.bf16.mxu0 %v2325_v16 }
  0x8a   :  { %1463 = vmatpush1.bf16.msra.mxu1 %v2320_v35  ;;  %v2403_v35 = vld [vmem:[#allocation4 + $0x244] ss:$16 sps:$4 sm:$0xff]  }
  0x8b   :  { %1464 = vmatprep.subr.bf16.mxu1 %v2328_v37  ;;  %v150_v37 = vsub.s32 2, %v2689_v9 }
  0x8c   :  { %1379 = vmatpush1.bf16.msra.mxu0 %v2323_v18 }
  0x8d   :  { %1380 = vmatprep.subr.bf16.mxu0 %v2331_v20 }
  0x8e   :  { %1465 = vmatpush1.bf16.msra.mxu1 %v2326_v39  ;;  %v2401_v39 = vld [vmem:[#allocation4 + $0x240] ss:$16 sps:$4 sm:$0xff]  }
  0x8f   :  { %1466 = vmatprep.subr.bf16.mxu1 %v2334_v41  ;;  %v2409_v41 = vld [vmem:[#allocation4 + $0x264] ss:$16 sps:$4 sm:$0xff]  }
  0x90   :  { %1381 = vmatpush1.bf16.msra.mxu0 %v2329_v22 }
  0x91   :  { %1382 = vmatprep.subr.bf16.mxu0 %v2337_v24 }
  0x92   :  { %1467 = vmatpush1.bf16.msra.mxu1 %v2332_v43  ;;  %v151_v43 = vrot.slane %v138_v11, %v150_v37 }
  0x93   :  { %1468 = vmatprep.subr.bf16.mxu1 %v2340_v45  ;;  %v2407_v45 = vld [vmem:[#allocation4 + $0x260] ss:$16 sps:$4 sm:$0xff]  }
  0x94   :  { %1383 = vmatpush1.bf16.msra.mxu0 %v2335_v26 }
  0x95   :  { %1384 = vmatprep.subr.bf16.mxu0 %v2343_v28 }
  0x96   :  { %1469 = vmatpush1.bf16.msra.mxu1 %v2338_v47  ;;  %v2415_v47 = vld [vmem:[#allocation4 + $0x284] ss:$16 sps:$4 sm:$0xff]  }
  0x97   :  { %1470 = vmatprep.subr.bf16.mxu1 %v2346_v49 }
  0x98   :  { %1385 = vmatpush1.bf16.msra.mxu0 %v2341_v30  ;;  %v2392_v30 = vld [vmem:[#allocation4 + $0x208] ss:$16 sps:$4 sm:$0xff]  }
  0x99   :  { %1386 = vmatprep.subr.bf16.mxu0 %v2349_v32  ;;  %v2400_v32 = vld [vmem:[#allocation4 + $0x22c] ss:$16 sps:$4 sm:$0xff]  }
  0x9a   :  { %1471 = vmatpush1.bf16.msra.mxu1 %v2344_v51 }
  0x9b   :  { %1472 = vmatprep.subr.bf16.mxu1 %v2352_v52 }
  0x9c   :  { %1387 = vmatpush1.bf16.msra.mxu0 %v2347_v34  ;;  %v2398_v34 = vld [vmem:[#allocation4 + $0x228] ss:$16 sps:$4 sm:$0xff]  }
  0x9d   :  { %1388 = vmatprep.subr.bf16.mxu0 %v2355_v36  ;;  %v2406_v36 = vld [vmem:[#allocation4 + $0x24c] ss:$16 sps:$4 sm:$0xff]  }
  0x9e   :  { %1473 = vmatpush1.bf16.msra.mxu1 %v2350_v53 }
  0x9f   :  { %1474 = vmatprep.subr.bf16.mxu1 %v2358_v54  ;;  %v2413_v54 = vld [vmem:[#allocation4 + $0x280] ss:$16 sps:$4 sm:$0xff]  }
  0xa0   :  { %1389 = vmatpush1.bf16.msra.mxu0 %v2353_v38  ;;  %v154_v38 = vsub.s32 3, %v2689_v9 }
  0xa1   :  { %1390 = vmatprep.subr.bf16.mxu0 %v2361_v40  ;;  %v2404_v40 = vld [vmem:[#allocation4 + $0x248] ss:$16 sps:$4 sm:$0xff]  }
  0xa2   :  { %1475 = vmatpush1.bf16.msra.mxu1 %v2356_v55  ;;  %v2416_v55 = vld [vmem:[#allocation4 + $0x288] ss:$16 sps:$4 sm:$0xff]  }
  0xa3   :  { %1476 = vmatprep.subr.bf16.mxu1 %v2364_v56 }
  0xa4   :  { %1391 = vmatpush1.bf16.msra.mxu0 %v2359_v42  ;;  %v2412_v42 = vld [vmem:[#allocation4 + $0x26c] ss:$16 sps:$4 sm:$0xff]  }
  0xa5   :  { %1392 = vmatprep.subr.bf16.mxu0 %v2367_v44  ;;  %v155_v44 = vrot.slane %v138_v11, %v154_v38  ;;  %v2433_v11 = vld [vmem:[#allocation4 + $0x2e4] ss:$16 sps:$4 sm:$0xff]  }
  0xa6   :  { %1477 = vmatpush1.bf16.msra.mxu1 %v2362_v57 }
  0xa7   :  { %1478 = vmatprep.subr.bf16.mxu1 %v2370_v58 }
  0xa8   :  { %1393 = vmatpush1.bf16.msra.mxu0 %v2365_v46  ;;  %v2410_v46 = vld [vmem:[#allocation4 + $0x268] ss:$16 sps:$4 sm:$0xff]  }
  0xa9   :  { %1394 = vmatprep.subr.bf16.mxu0 %v2373_v48  ;;  %v2418_v48 = vld [vmem:[#allocation4 + $0x28c] ss:$16 sps:$4 sm:$0xff]  }
  0xaa   :  { %1479 = vmatpush1.bf16.msra.mxu1 %v2368_v59  ;;  %v2421_v59 = vld [vmem:[#allocation4 + $0x2a4] ss:$16 sps:$4 sm:$0xff]  }
  0xab   :  { %1480 = vmatprep.subr.bf16.mxu1 %v2376_v60  ;;  %v2424_v60 = vld [vmem:[#allocation4 + $0x2ac] ss:$16 sps:$4 sm:$0xff]  }
  0xac   :  { %1395 = vmatpush1.bf16.msra.mxu0 %v2371_v50 }
  0xad   :  { %1396 = vmatprep.subr.bf16.mxu0 %v2379_v62 }
  0xae   :  { %1481 = vmatpush1.bf16.msra.mxu1 %v2374_v61 }
  0xaf   :  { %1482 = vmatprep.subr.bf16.mxu1 %v2382_v63 }
  0xb0   :  { %1397 = vmatpush1.bf16.msra.mxu0 %v2377_v0 }
  0xb1   :  { %1398 = vmatprep.subr.bf16.mxu0 %v2385_v2  ;;  %v2422_v2 = vld [vmem:[#allocation4 + $0x2a8] ss:$16 sps:$4 sm:$0xff]  }
  0xb2   :  { %1483 = vmatpush1.bf16.msra.mxu1 %v2380_v1  ;;  %v2419_v1 = vld [vmem:[#allocation4 + $0x2a0] ss:$16 sps:$4 sm:$0xff]  }
  0xb3   :  { %1484 = vmatprep.subr.bf16.mxu1 %v2388_v3 }
  0xb4   :  { %1399 = vmatpush1.bf16.msra.mxu0 %v2383_v4  ;;  %v2427_v4 = vld [vmem:[#allocation4 + $0x2c4] ss:$16 sps:$4 sm:$0xff]  }
  0xb5   :  { %1411 = vmatprep.subr.bf16.mxu0 %v2391_v6 }
  0xb6   :  { %1485 = vmatpush1.bf16.msra.mxu1 %v2386_v5  ;;  %v2430_v5 = vld [vmem:[#allocation4 + $0x2cc] ss:$16 sps:$4 sm:$0xff]  }
  0xb7   :  { %1497 = vmatprep.subr.bf16.mxu1 %v2394_v7  ;;  %v2425_v7 = vld [vmem:[#allocation4 + $0x2c0] ss:$16 sps:$4 sm:$0xff]  }
 0x14a   :  { %v514_v15 = vpop.f32.mrb[0].mxu0 }
 0x14b   :  { %v515_v16 = vadd.f32 %v514_v15, %v143_v13  ;;  %v516_v17 = vpop.f32.mrb[1].mxu0  ;;  %v2434_v15 = vld [vmem:[#allocation4 + $0x2e8] ss:$16 sps:$4 sm:$0xff]  }
 0x14c   :  { %v517_v18 = vadd.f32 %v516_v17, %v147_v14  ;;  %v518_v19 = vpop.f32.mrb[2].mxu0  ;;  %v557_v49 = vpop.f32.mrb[0].mxu1  ;;  %v2442_v17 = vld [vmem:[#allocation4 + $0x30c] ss:$16 sps:$4 sm:$0xff]  }
 0x14d   :  { %v519_v20 = vadd.f32 %v518_v19, %v143_v13  ;;  %v520_v21 = vpop.f32.mrb[3].mxu0  ;;  %v566_v23 = vmax.f32 %v515_v16, 0.0  ;;  %v558_v50 = vadd.f32 %v557_v49, %v151_v43  ;;  %v559_v51 = vpop.f32.mrb[1].mxu1  ;;  %v2436_v13 = vld [vmem:[#allocation4 + $0x2ec] ss:$16 sps:$4 sm:$0xff]  }
 0x14e   :  { %v521_v22 = vadd.f32 %v520_v21, %v147_v14  ;;  %v567_v25 = vmax.f32 %v517_v18, 0.0  ;;  %v560_v52 = vadd.f32 %v559_v51, %v155_v44  ;;  %v561_v53 = vpop.f32.mrb[2].mxu1  ;;  %v2431_v14 = vld [vmem:[#allocation4 + $0x2e0] ss:$16 sps:$4 sm:$0xff]   ;;  %v2439_v16 = vld [vmem:[#allocation4 + $0x304] ss:$16 sps:$4 sm:$0xff]  }
 0x14f   :  { %v570_v24 = vmax.f32 %v519_v20, 0.0  ;;  %v568_v56 = vmax.f32 %v558_v50, 0.0  ;;  %v562_v57 = vadd.f32 %v561_v53, %v151_v43  ;;  %v563_v58 = vpop.f32.mrb[3].mxu1  ;;  %v2437_v18 = vld [vmem:[#allocation4 + $0x300] ss:$16 sps:$4 sm:$0xff]  }
 0x150   :  { %v571_v26 = vmax.f32 %v521_v22, 0.0  ;;  %v569_v61 = vmax.f32 %v560_v52, 0.0  ;;  %v564_v62 = vadd.f32 %v563_v58, %v155_v44  ;;  %v2440_v19 = vld [vmem:[#allocation4 + $0x308] ss:$16 sps:$4 sm:$0xff]   ;;  %v2445_v20 = vld [vmem:[#allocation4 + $0x324] ss:$16 sps:$4 sm:$0xff]  }
 0x151   :  { %v574_v27 = vpack.c.bf16 %v570_v24, %v566_v23  ;;  %v572_v63 = vmax.f32 %v562_v57, 0.0  ;;  %v2448_v21 = vld [vmem:[#allocation4 + $0x32c] ss:$16 sps:$4 sm:$0xff]   ;;  %v2443_v22 = vld [vmem:[#allocation4 + $0x320] ss:$16 sps:$4 sm:$0xff]  }
 0x152   :  { %v575_v28 = vpack.c.bf16 %v571_v26, %v567_v25  ;;  %v573_v0 = vmax.f32 %v564_v62, 0.0  ;;  %v2446_v23 = vld [vmem:[#allocation4 + $0x328] ss:$16 sps:$4 sm:$0xff]   ;;  %v2451_v24 = vld [vmem:[#allocation4 + $0x344] ss:$16 sps:$4 sm:$0xff]  }
 0x153   :  { %v2706_v3 = vpack.c.bf16 %v572_v63, %v568_v56  ;;  %v2454_v25 = vld [vmem:[#allocation4 + $0x34c] ss:$16 sps:$4 sm:$0xff]   ;;  %v2449_v26 = vld [vmem:[#allocation4 + $0x340] ss:$16 sps:$4 sm:$0xff]   ;;  %v2482_v49 = vld [vmem:[#allocation4 + $0x3e8] ss:$16 sps:$4 sm:$0xff]  }
 0x154   :  { %1400 = vmatprep.mubr.bf16.mxu0 %v575_v28  ;;  %1486 = vmatprep.mubr.bf16.mxu1 %v575_v28  ;;  %v577_v6 = vpack.c.bf16 %v573_v0, %v569_v61  ;;  %v2457_v28 = vld [vmem:[#allocation4 + $0x364] ss:$16 sps:$4 sm:$0xff]   ;;  %v2478_v43 = vld [vmem:[#allocation4 + $0x3cc] ss:$16 sps:$4 sm:$0xff]   ;;  %v2473_v44 = vld [vmem:[#allocation4 + $0x3c0] ss:$16 sps:$4 sm:$0xff]  }
 0x155   :  { %1401 = vmatmul.mubr.bf16.vlgmr.msra.gmra.mrb[4].mxu0 %v574_v27  ;;  %1487 = vmatmul.mubr.bf16.vlgmr.msra.gmra.mrb[4].mxu1 %v574_v27  ;;  %v2452_v27 = vld [vmem:[#allocation4 + $0x348] ss:$16 sps:$4 sm:$0xff]   ;;  %v2485_v50 = vld [vmem:[#allocation6 + $0x40] sm:$0xff]   ;;  %v2493_v58 = vld [vmem:[#allocation6 + $0x50] sm:$0xff]  }
 0x156   :  { %1412 = vmatpush1.bf16.msra.mxu0 %v2389_v29  ;;  %1498 = vmatpush1.bf16.msra.mxu1 %v2392_v30  ;;  %v2460_v29 = vld [vmem:[#allocation4 + $0x36c] ss:$16 sps:$4 sm:$0xff]   ;;  %v2455_v30 = vld [vmem:[#allocation4 + $0x360] ss:$16 sps:$4 sm:$0xff]  }
 0x157   :  { %1413 = vmatprep.subr.bf16.mxu0 %v2397_v31  ;;  %1499 = vmatprep.subr.bf16.mxu1 %v2400_v32  ;;  %v2458_v31 = vld [vmem:[#allocation4 + $0x368] ss:$16 sps:$4 sm:$0xff]   ;;  %v2463_v32 = vld [vmem:[#allocation4 + $0x384] ss:$16 sps:$4 sm:$0xff]  }
 0x158   :  { %1443 = vmatprep.mubr.bf16.mxu0 %v577_v6  ;;  %1529 = vmatprep.mubr.bf16.mxu1 %v577_v6  ;;  %v2486_v51 = vld [vmem:[#allocation6 + $0xc0] sm:$0xff]   ;;  %v2491_v56 = vld [vmem:[#allocation6 + $0x8] sm:$0xff]   ;;  %v2496_v61 = vld [vmem:[#allocation6 + $0x90] sm:$0xff]  }
 0x159   :  { %v2487_v52 = vld [vmem:[#allocation6] sm:$0xff]   ;;  %v2492_v57 = vld [vmem:[#allocation6 + $0x88] sm:$0xff]   ;;  %v2497_v62 = vld [vmem:[#allocation6 + $0x58] sm:$0xff]  }
 0x15a   :  { %1414 = vmatpush1.bf16.msra.mxu0 %v2395_v33  ;;  %1500 = vmatpush1.bf16.msra.mxu1 %v2398_v34  ;;  %v2466_v33 = vld [vmem:[#allocation4 + $0x38c] ss:$16 sps:$4 sm:$0xff]   ;;  %v2461_v34 = vld [vmem:[#allocation4 + $0x380] ss:$16 sps:$4 sm:$0xff]  }
 0x15b   :  { %1415 = vmatprep.subr.bf16.mxu0 %v2403_v35  ;;  %1501 = vmatprep.subr.bf16.mxu1 %v2406_v36  ;;  %v2464_v35 = vld [vmem:[#allocation4 + $0x388] ss:$16 sps:$4 sm:$0xff]   ;;  %v2469_v36 = vld [vmem:[#allocation4 + $0x3a4] ss:$16 sps:$4 sm:$0xff]  }
 0x15c   :  { %v2488_v53 = vld [vmem:[#allocation6 + $0x80] sm:$0xff]   ;;  %v2498_v63 = vld [vmem:[#allocation6 + $0xd8] sm:$0xff]   ;;  %v2505_v6 = vld [vmem:[#allocation6 + $0x68] sm:$0xff]  }
 0x15d   :  { %v2499_v0 = vld [vmem:[#allocation6 + $0x18] sm:$0xff]  }
 0x15e   :  { %1416 = vmatpush1.bf16.msra.mxu0 %v2401_v39  ;;  %1502 = vmatpush1.bf16.msra.mxu1 %v2404_v40  ;;  %v2472_v39 = vld [vmem:[#allocation4 + $0x3ac] ss:$16 sps:$4 sm:$0xff]   ;;  %v2467_v40 = vld [vmem:[#allocation4 + $0x3a0] ss:$16 sps:$4 sm:$0xff]  }
 0x15f   :  { %1417 = vmatprep.subr.bf16.mxu0 %v2409_v41  ;;  %1503 = vmatprep.subr.bf16.mxu1 %v2412_v42  ;;  %v2470_v41 = vld [vmem:[#allocation4 + $0x3a8] ss:$16 sps:$4 sm:$0xff]   ;;  %v2475_v42 = vld [vmem:[#allocation4 + $0x3c4] ss:$16 sps:$4 sm:$0xff]  }
 0x162   :  { %1418 = vmatpush1.bf16.msra.mxu0 %v2407_v45  ;;  %1504 = vmatpush1.bf16.msra.mxu1 %v2410_v46  ;;  %v2476_v45 = vld [vmem:[#allocation4 + $0x3c8] ss:$16 sps:$4 sm:$0xff]   ;;  %v2481_v46 = vld [vmem:[#allocation4 + $0x3e4] ss:$16 sps:$4 sm:$0xff]  }
 0x163   :  { %1419 = vmatprep.subr.bf16.mxu0 %v2415_v47  ;;  %1505 = vmatprep.subr.bf16.mxu1 %v2418_v48  ;;  %v2484_v47 = vld [vmem:[#allocation4 + $0x3ec] ss:$16 sps:$4 sm:$0xff]   ;;  %v2479_v48 = vld [vmem:[#allocation4 + $0x3e0] ss:$16 sps:$4 sm:$0xff]  }
 0x166   :  { %1420 = vmatpush1.bf16.msra.mxu0 %v2413_v54  ;;  %1506 = vmatpush1.bf16.msra.mxu1 %v2416_v55  ;;  %v2489_v54 = vld [vmem:[#allocation6 + $0x48] sm:$0xff]  }
 0x167   :  { %1421 = vmatprep.subr.bf16.mxu0 %v2421_v59  ;;  %1507 = vmatprep.subr.bf16.mxu1 %v2424_v60  ;;  %v2490_v55 = vld [vmem:[#allocation6 + $0xc8] sm:$0xff]   ;;  %v2494_v59 = vld [vmem:[#allocation6 + $0xd0] sm:$0xff]  }
 0x168   :  { %v2495_v60 = vld [vmem:[#allocation6 + $0x10] sm:$0xff]  }
 0x16a   :  { %1422 = vmatpush1.bf16.msra.mxu0 %v2419_v1  ;;  %1508 = vmatpush1.bf16.msra.mxu1 %v2422_v2  ;;  %v2500_v1 = vld [vmem:[#allocation6 + $0x98] sm:$0xff]   ;;  %v2501_v2 = vld [vmem:[#allocation6 + $0x60] sm:$0xff]  }
 0x16b   :  { %1423 = vmatprep.subr.bf16.mxu0 %v2427_v4  ;;  %1509 = vmatprep.subr.bf16.mxu1 %v2430_v5  ;;  %v2503_v4 = vld [vmem:[#allocation6 + $0x20] sm:$0xff]  }
 0x16c   :  { %v2504_v5 = vld [vmem:[#allocation6 + $0xa0] sm:$0xff]  }
 0x16e   :  { %1424 = vmatpush1.bf16.msra.mxu0 %v2425_v7  ;;  %1510 = vmatpush1.bf16.msra.mxu1 %v2428_v8  ;;  %v2506_v7 = vld [vmem:[#allocation6 + $0xe8] sm:$0xff]  }
 0x16f   :  { %1425 = vmatprep.subr.bf16.mxu0 %v2433_v11  ;;  %1511 = vmatprep.subr.bf16.mxu1 %v2436_v13  ;;  %v2507_v8 = vld [vmem:[#allocation6 + $0x28] sm:$0xff]   ;;  %v2509_v13 = vld [vmem:[#allocation6 + $0x70] sm:$0xff]  }
 0x170   :  { %v2508_v11 = vld [vmem:[#allocation6 + $0xa8] sm:$0xff]  }
 0x172   :  { %1426 = vmatpush1.bf16.msra.mxu0 %v2431_v14  ;;  %1512 = vmatpush1.bf16.msra.mxu1 %v2434_v15  ;;  %v2510_v14 = vld [vmem:[#allocation6 + $0xf0] sm:$0xff]  }
 0x173   :  { %1427 = vmatprep.subr.bf16.mxu0 %v2439_v16  ;;  %1513 = vmatprep.subr.bf16.mxu1 %v2442_v17  ;;  %v2511_v15 = vld [vmem:[#allocation6 + $0x30] sm:$0xff]   ;;  %v2513_v17 = vld [vmem:[#allocation6 + $0x78] sm:$0xff]  }
 0x174   :  { %v2512_v16 = vld [vmem:[#allocation6 + $0xb0] sm:$0xff]  }
 0x176   :  { %1428 = vmatpush1.bf16.msra.mxu0 %v2437_v18  ;;  %1514 = vmatpush1.bf16.msra.mxu1 %v2440_v19  ;;  %v2514_v18 = vld [vmem:[#allocation6 + $0xf8] sm:$0xff]  }
 0x177   :  { %1429 = vmatprep.subr.bf16.mxu0 %v2445_v20  ;;  %1515 = vmatprep.subr.bf16.mxu1 %v2448_v21  ;;  %v2515_v19 = vld [vmem:[#allocation6 + $0x38] sm:$0xff]   ;;  %v706_v21 = vld [vmem:[%s2734_s4] sm:$0xf] }
 0x178   :  { %v2516_v20 = vld [vmem:[#allocation6 + $0xb8] sm:$0xff]  }
 0x17a   :  { %1430 = vmatpush1.bf16.msra.mxu0 %v2443_v22  ;;  %1516 = vmatpush1.bf16.msra.mxu1 %v2446_v23  ;;  %v711_v22 = vrot.slane %v706_v21, %v142_v10  ;;  %v719_v23 = vrot.slane %v706_v21, %v150_v37 }
 0x17b   :  { %1431 = vmatprep.subr.bf16.mxu0 %v2451_v24  ;;  %1517 = vmatprep.subr.bf16.mxu1 %v2454_v25  ;;  %v715_v24 = vrot.slane %v706_v21, %v146_v12  ;;  %v723_v25 = vrot.slane %v706_v21, %v154_v38 }
 0x17e   :  { %1432 = vmatpush1.bf16.msra.mxu0 %v2449_v26  ;;  %1518 = vmatpush1.bf16.msra.mxu1 %v2452_v27 }
 0x17f   :  { %1433 = vmatprep.subr.bf16.mxu0 %v2457_v28  ;;  %1519 = vmatprep.subr.bf16.mxu1 %v2460_v29 }
 0x182   :  { %1434 = vmatpush1.bf16.msra.mxu0 %v2455_v30  ;;  %1520 = vmatpush1.bf16.msra.mxu1 %v2458_v31 }
 0x183   :  { %1435 = vmatprep.subr.bf16.mxu0 %v2463_v32  ;;  %1521 = vmatprep.subr.bf16.mxu1 %v2466_v33 }
 0x186   :  { %1436 = vmatpush1.bf16.msra.mxu0 %v2461_v34  ;;  %1522 = vmatpush1.bf16.msra.mxu1 %v2464_v35 }
 0x187   :  { %1437 = vmatprep.subr.bf16.mxu0 %v2469_v36  ;;  %1523 = vmatprep.subr.bf16.mxu1 %v2472_v39 }
 0x18a   :  { %1438 = vmatpush1.bf16.msra.mxu0 %v2467_v40  ;;  %1524 = vmatpush1.bf16.msra.mxu1 %v2470_v41 }
 0x18b   :  { %1439 = vmatprep.subr.bf16.mxu0 %v2475_v42  ;;  %1525 = vmatprep.subr.bf16.mxu1 %v2478_v43 }
 0x18e   :  { %1440 = vmatpush1.bf16.msra.mxu0 %v2473_v44  ;;  %1526 = vmatpush1.bf16.msra.mxu1 %v2476_v45 }
 0x18f   :  { %1441 = vmatprep.subr.bf16.mxu0 %v2481_v46  ;;  %1527 = vmatprep.subr.bf16.mxu1 %v2484_v47 }
 0x192   :  { %1442 = vmatpush1.bf16.msra.mxu0 %v2479_v48  ;;  %1528 = vmatpush1.bf16.msra.mxu1 %v2482_v49 }
 0x193   :  { %2130 = vmatprep.subr.bf16.mxu0 %v2485_v50  ;;  %2152 = vmatprep.subr.bf16.mxu1 %v2486_v51 }
 0x195   :  { %1444 = vmatmul.mubr.bf16.vlgmr.msra.gmra.mrb[4].mxu0 %v2706_v3  ;;  %1530 = vmatmul.mubr.bf16.vlgmr.msra.gmra.mrb[4].mxu1 %v2706_v3  ;;  %v2502_v3 = vld [vmem:[#allocation6 + $0xe0] sm:$0xff]  }
 0x196   :  { %2131 = vmatpush3.bf16.msra.mxu0 %v2487_v52  ;;  %2153 = vmatpush3.bf16.msra.mxu1 %v2488_v53  ;;  %v2097_v53 = vld [vmem:[%s2736_s6] ss:$0 sm:$0xff] }
 0x197   :  { %2132 = vmatprep.subr.bf16.mxu0 %v2489_v54  ;;  %2154 = vmatprep.subr.bf16.mxu1 %v2490_v55 }
 0x19a   :  { %2133 = vmatpush3.bf16.msra.mxu0 %v2491_v56  ;;  %2155 = vmatpush3.bf16.msra.mxu1 %v2492_v57 }
 0x19b   :  { %2134 = vmatprep.subr.bf16.mxu0 %v2493_v58  ;;  %2156 = vmatprep.subr.bf16.mxu1 %v2494_v59 }
 0x19e   :  { %2135 = vmatpush3.bf16.msra.mxu0 %v2495_v60  ;;  %2157 = vmatpush3.bf16.msra.mxu1 %v2496_v61 }
 0x19f   :  { %2136 = vmatprep.subr.bf16.mxu0 %v2497_v62  ;;  %2158 = vmatprep.subr.bf16.mxu1 %v2498_v63 }
 0x1a2   :  { %2137 = vmatpush3.bf16.msra.mxu0 %v2499_v0  ;;  %2159 = vmatpush3.bf16.msra.mxu1 %v2500_v1 }
 0x1a3   :  { %2138 = vmatprep.subr.bf16.mxu0 %v2501_v2  ;;  %2160 = vmatprep.subr.bf16.mxu1 %v2502_v3 }
 0x1a6   :  { %2139 = vmatpush3.bf16.msra.mxu0 %v2503_v4  ;;  %2161 = vmatpush3.bf16.msra.mxu1 %v2504_v5 }
 0x1a7   :  { %2140 = vmatprep.subr.bf16.mxu0 %v2505_v6  ;;  %2162 = vmatprep.subr.bf16.mxu1 %v2506_v7 }
 0x1aa   :  { %2141 = vmatpush3.bf16.msra.mxu0 %v2507_v8  ;;  %2163 = vmatpush3.bf16.msra.mxu1 %v2508_v11 }
 0x1ab   :  { %2142 = vmatprep.subr.bf16.mxu0 %v2509_v13  ;;  %2164 = vmatprep.subr.bf16.mxu1 %v2510_v14 }
 0x1ae   :  { %2143 = vmatpush3.bf16.msra.mxu0 %v2511_v15  ;;  %2165 = vmatpush3.bf16.msra.mxu1 %v2512_v16 }
 0x1af   :  { %2144 = vmatprep.subr.bf16.mxu0 %v2513_v17  ;;  %2166 = vmatprep.subr.bf16.mxu1 %v2514_v18 }
 0x1b2   :  { %2145 = vmatpush3.bf16.msra.mxu0 %v2515_v19  ;;  %2167 = vmatpush3.bf16.msra.mxu1 %v2516_v20 }
 0x268   :  { %v1445_v26 = vpop.f32.mrb[4].mxu0  ;;  %v1531_v27 = vpop.f32.mrb[4].mxu1 }
 0x269   :  { %v2174_v28 = vadd.f32 %v1445_v26, %v711_v22  ;;  %v2178_v29 = vadd.f32 %v1531_v27, %v719_v23  ;;  %v1447_v30 = vpop.f32.mrb[5].mxu0  ;;  %v1533_v31 = vpop.f32.mrb[5].mxu1 }
 0x26a   :  { %v2175_v32 = vadd.f32 %v1447_v30, %v715_v24  ;;  %v2179_v33 = vadd.f32 %v1533_v31, %v723_v25  ;;  %v1449_v34 = vpop.f32.mrb[6].mxu0  ;;  %v1535_v35 = vpop.f32.mrb[6].mxu1 }
 0x26b   :  { %v2176_v10 = vadd.f32 %v1449_v34, %v711_v22  ;;  %v2180_v36 = vadd.f32 %v1535_v35, %v719_v23  ;;  %v1451_v39 = vpop.f32.mrb[7].mxu0  ;;  %v1537_v37 = vpop.f32.mrb[7].mxu1  ;;  %v1540_v12 = vmax.f32 %v2174_v28, 0.0  ;;  %v1542_v42 = vmax.f32 %v2178_v29, 0.0 }
 0x26c   :  { %v2177_v40 = vadd.f32 %v1451_v39, %v715_v24  ;;  %v2181_v41 = vadd.f32 %v1537_v37, %v723_v25  ;;  %v1541_v43 = vmax.f32 %v2175_v32, 0.0  ;;  %v1543_v44 = vmax.f32 %v2179_v33, 0.0 }
 0x26d   :  { %v1544_v9 = vmax.f32 %v2176_v10, 0.0  ;;  %v1546_v38 = vmax.f32 %v2180_v36, 0.0 }
 0x26e   :  { %v1545_v45 = vmax.f32 %v2177_v40, 0.0  ;;  %v1547_v46 = vmax.f32 %v2181_v41, 0.0 }
 0x26f   :  { %v1548_v47 = vpack.c.bf16 %v1544_v9, %v1540_v12  ;;  %v1550_v48 = vpack.c.bf16 %v1546_v38, %v1542_v42 }
 0x270   :  { %v1549_v49 = vpack.c.bf16 %v1545_v45, %v1541_v43  ;;  %v1551_v50 = vpack.c.bf16 %v1547_v46, %v1543_v44 }
 0x272   :  { %1847 = vmatprep.mubr.bf16.mxu0 %v1549_v49  ;;  %1888 = vmatprep.mubr.bf16.mxu1 %v1551_v50 }
 0x273   :  { %1848 = vmatmul.mubr.bf16.vlgmr.msra.gmra.mrb[8].mxu0 %v1548_v47  ;;  %1889 = vmatmul.mubr.bf16.vlgmr.msra.gmra.mrb[8].mxu1 %v1550_v48 }
 0x346   :  { %v2146_v51 = vpop.f32.mrb[8].mxu0  ;;  %v2168_v52 = vpop.f32.mrb[8].mxu1 }
 0x347   :  { %v2147_v54 = vpop.f32.mrb[9].mxu0  ;;  %v2169_v55 = vpop.f32.mrb[9].mxu1 }
 0x348   :  { %v2148_v56 = vadd.f32 %v2147_v54, %v2146_v51  ;;  %v2170_v57 = vadd.f32 %v2169_v55, %v2168_v52  ;;  %v2149_v58 = vpop.f32.mrb[10].mxu0  ;;  %v2171_v59 = vpop.f32.mrb[10].mxu1 }
 0x349   :  { %v2150_v60 = vpop.f32.mrb[11].mxu0  ;;  %v2172_v61 = vpop.f32.mrb[11].mxu1 }
 0x34a   :  { %v1850_v62 = vadd.f32 %v2148_v56, %v2097_v53  ;;  %v2151_v63 = vadd.f32 %v2150_v60, %v2149_v58  ;;  %v2173_v0 = vadd.f32 %v2172_v61, %v2171_v59 }
 0x34c   :  { %v1891_v1 = vadd.f32 %v2170_v57, %v1850_v62  ;;  %v1853_v2 = vadd.f32 %v2151_v63, %v2097_v53 }
 0x34e   :  { %1897 = vst [vmem:[%s2737_s7] sm:$0xff] %v1891_v1  ;;  %v1894_v3 = vadd.f32 %v2173_v0, %v1853_v2 }
 0x350   :  { %1898 = vst [vmem:[%s2737_s7 + $0x8] sm:$0xff] %v1894_v3 }
 0x351   :  { %1903 = vsyncpa [#allocation3], 1 }
 0x352   :  { %1904 = vsyncpa [#allocation5], 1 }

</bundles_post_ra>
